<compile_context>
chip_gen: v7x
topology: tpu7x:2x2x1
jax: 0.10.0
libtpu: 0.0.40
codegen_flags: <defaults>
</compile_context>

<pallas_src>
import collections
import functools

import jax
import jax.numpy as jnp
import numpy as np
from jax.experimental import pallas as pl
from jax.experimental.pallas import tpu as pltpu

HeadOpsOutput = collections.namedtuple(
    'HeadOpsOutput',
    ('AllWeights', 'ReadWeighings', 'WriteWeighings', 'EraseMatList', 'AddMatList'))

PrevHeadOpsTensors = collections.namedtuple('PrevHeadOpsTensors', ('Prev_W_List',))


# ---------------------------------------------------------------------------
# helpers (used identically inside the kernel and in the pure-JAX reference)
# ---------------------------------------------------------------------------
def _softplus_t20(x):
    # torch.nn.Softplus(threshold=20): x if x > 20 else log1p(exp(x))
    return jnp.where(x > 20.0, x, jnp.log1p(jnp.exp(jnp.minimum(x, 20.0))))


def _sigmoid(x):
    return 1.0 / (1.0 + jnp.exp(-x))


def _static_roll_last(x, shift, n):
    # result[..., j] = x[..., (j - shift) mod n]   (shift is a Python int)
    s = shift % n
    if s == 0:
        return x
    return jnp.concatenate([x[..., n - s:], x[..., :n - s]], axis=-1)


# ---------------------------------------------------------------------------
# fused Pallas kernel: one batch element per grid step, ALL heads at once
# ---------------------------------------------------------------------------
def _fused_head_kernel(k_ref, mem_ref, s_ref, bgg_ref, prevw_ref, a_ref, e_ref,
                       w_ref, a_out_ref, e_out_ref, *, eps, shift_range):
    # Block shapes (leading batch dim of 1 kept explicit):
    #   k_ref     [1, H, M]      raw content keys (pre-tanh), slot dims flattened
    #   mem_ref   [1, N, M]      previous memory, slot dims flattened
    #   s_ref     [1, H, S]      raw shift logits (S = 2*shift_range + 1)
    #   bgg_ref   [1, H, 3]      (beta, g, gamma) raw scalars per head
    #   prevw_ref [1, H, N]      previous weightings
    #   a_ref/e_ref [1, M1, WH*M2]  raw add / erase interface slabs
    K = jnp.tanh(k_ref[...])                                   # [1, H, M]
    mem = mem_ref[...]                                         # [1, N, M]

    # --- content similarity (Frobenius cosine), numerator on the MXU -------
    dot = jnp.einsum('bhm,bnm->bhn', K, mem,
                     preferred_element_type=jnp.float32,
                     precision=jax.lax.Precision.HIGHEST)      # [1, H, N]
    normK = jnp.sqrt(jnp.sum(K * K, axis=2, keepdims=True))    # [1, H, 1]
    normMem = jnp.sqrt(jnp.sum(mem * mem, axis=2))             # [1, N]   (computed once)
    sim = dot / (normK * normMem[:, None, :] + eps)            # [1, H, N]

    bgg = bgg_ref[...]                                         # [1, H, 3]
    beta = bgg[:, :, 0:1]
    g = bgg[:, :, 1:2]
    gamma = bgg[:, :, 2:3]

    # --- content weighting --------------------------------------------------
    beta_c = 1.0 + _softplus_t20(beta)                         # [1, H, 1]
    expo = jnp.exp(jnp.clip(beta_c * sim, 0.0, 80.0))          # [1, H, N]
    W_c = expo / (jnp.sum(expo, axis=2, keepdims=True) + eps)

    # --- interpolation gate --------------------------------------------------
    g_c = _sigmoid(g)                                          # [1, H, 1]
    W_g = g_c * W_c + (1.0 - g_c) * prevw_ref[...]             # [1, H, N]

    # --- shift softmax + circular convolution -------------------------------
    s = s_ref[...]                                             # [1, H, S]
    s_exp = jnp.exp(jnp.clip(s, 0.0, 80.0))
    s_soft = s_exp / (jnp.sum(s_exp, axis=2, keepdims=True) + eps)

    S = 2 * shift_range + 1
    N = W_g.shape[2]
    W_hat = jnp.zeros_like(W_g)
    for k in range(S):                                         # static unroll
        W_hat = W_hat + s_soft[:, :, k:k + 1] * _static_roll_last(W_g, shift_range - k, N)

    # --- sharpening ----------------------------------------------------------
    gamma_c = 1.0 + _softplus_t20(gamma)                       # [1, H, 1]
    W_sharp = jnp.power(W_hat, gamma_c)
    denom = jnp.sum(W_sharp, axis=2, keepdims=True) + eps
    w_ref[...] = W_sharp * pl.reciprocal(denom, approx=True)

    # --- erase / add activations (fused, elementwise) ------------------------
    a_out_ref[...] = jnp.tanh(a_ref[...])
    e_out_ref[...] = _sigmoid(e_ref[...])


# ---------------------------------------------------------------------------
# module wrapper
# ---------------------------------------------------------------------------
class MNTMHeadOpPallas:
    def __init__(self, Num_MemSlots, MemorySlot_dims, num_RH, num_WH,
                 shift_range=1, eps=1e-8):
        if len(MemorySlot_dims) > 2:
            raise ValueError('Currently, only 3 Dimensional Orthotopal Memory is supported.')
        self.N = Num_MemSlots
        self.MemorySlot_dims = MemorySlot_dims
        self.num_RH = num_RH
        self.num_WH = num_WH
        self.shift_range = shift_range
        self.eps = eps
        self.M1 = MemorySlot_dims[0]
        self.M2 = MemorySlot_dims[1]
        self.total_heads = num_RH + num_WH

    def __call__(self, InterfaceMatrices, Prev_Memory, PrevHeadOps):
        Prev_W_List = (PrevHeadOps.Prev_W_List
                       if hasattr(PrevHeadOps, 'Prev_W_List') else PrevHeadOps)

        B = Prev_Memory.shape[0]
        H = self.total_heads
        N, M1, M2 = self.N, self.M1, self.M2
        M = M1 * M2
        S = 2 * self.shift_range + 1
        WHM2 = self.num_WH * M2

        K_t = InterfaceMatrices['K_t'].astype(jnp.float32)            # [B, M1, H*M2]
        AE = InterfaceMatrices['A_t_and_E_t'].astype(jnp.float32)     # [B, M1, 2*WH*M2]
        s_t = InterfaceMatrices['s_t'].astype(jnp.float32)            # [B, S, H]
        bgg = InterfaceMatrices['beta_g_gamma'].astype(jnp.float32)   # [B, 3, H]

        # --- host-side layout plumbing (single tiny pass per tensor) ---------
        K_bhm = K_t.reshape(B, M1, H, M2).transpose(0, 2, 1, 3).reshape(B, H, M)
        mem_flat = Prev_Memory.astype(jnp.float32).reshape(B, N, M)
        s_bhs = s_t.transpose(0, 2, 1)                                # [B, H, S]
        bgg_bh3 = bgg.transpose(0, 2, 1)                              # [B, H, 3]
        prevW = jnp.stack([w.astype(jnp.float32) for w in Prev_W_List], axis=1)  # [B, H, N]
        A_raw = AE[:, :, :WHM2]                                       # [B, M1, WH*M2]
        E_raw = AE[:, :, WHM2:2 * WHM2]                               # [B, M1, WH*M2]

        kernel = functools.partial(_fused_head_kernel, eps=self.eps,
                                   shift_range=self.shift_range)

        W_all, A_out, E_out = pl.pallas_call(
            kernel,
            out_shape=(
                jax.ShapeDtypeStruct((B, H, N), jnp.float32),
                jax.ShapeDtypeStruct((B, M1, WHM2), jnp.float32),
                jax.ShapeDtypeStruct((B, M1, WHM2), jnp.float32),
            ),
            grid=(B,),
            in_specs=[
                pl.BlockSpec((1, H, M), lambda b: (b, 0, 0)),     # keys
                pl.BlockSpec((1, N, M), lambda b: (b, 0, 0)),     # memory
                pl.BlockSpec((1, H, S), lambda b: (b, 0, 0)),     # shift logits
                pl.BlockSpec((1, H, 3), lambda b: (b, 0, 0)),     # beta/g/gamma
                pl.BlockSpec((1, H, N), lambda b: (b, 0, 0)),     # prev weightings
                pl.BlockSpec((1, M1, WHM2), lambda b: (b, 0, 0)), # add raw
                pl.BlockSpec((1, M1, WHM2), lambda b: (b, 0, 0)), # erase raw
            ],
            out_specs=[
                pl.BlockSpec((1, H, N), lambda b: (b, 0, 0)),
                pl.BlockSpec((1, M1, WHM2), lambda b: (b, 0, 0)),
                pl.BlockSpec((1, M1, WHM2), lambda b: (b, 0, 0)),
            ],
            compiler_params=pltpu.CompilerParams(
                dimension_semantics=("parallel",)),
        )(K_bhm, mem_flat, s_bhs, bgg_bh3, prevW, A_raw, E_raw)

        New_W_list = [W_all[:, h, :] for h in range(H)]
        R_list = New_W_list[:self.num_RH]
        W_list = New_W_list[self.num_RH:self.num_RH + self.num_WH]
        A_list = [A_out[:, :, i * M2:(i + 1) * M2] for i in range(self.num_WH)]
        E_list = [E_out[:, :, i * M2:(i + 1) * M2] for i in range(self.num_WH)]
        return HeadOpsOutput(AllWeights=New_W_list, ReadWeighings=R_list,
                             WriteWeighings=W_list, EraseMatList=E_list,
                             AddMatList=A_list)


# ---------------------------------------------------------------------------
# pure-JAX reference (mirrors the PyTorch forward) for correctness checking
# ---------------------------------------------------------------------------
def reference_forward(N, M1, M2, num_RH, num_WH, shift_range, eps,
                      InterfaceMatrices, Prev_Memory, Prev_W_List):
    H = num_RH + num_WH
    B = Prev_Memory.shape[0]
    S = 2 * shift_range + 1
    K_t = InterfaceMatrices['K_t']
    AE = InterfaceMatrices['A_t_and_E_t']
    s_t = InterfaceMatrices['s_t']
    bgg = InterfaceMatrices['beta_g_gamma']

    K_list = [K_t[:, :, i * M2:(i + 1) * M2] for i in range(H)]
    AE_list = [AE[:, :, i * M2:(i + 1) * M2] for i in range(2 * num_WH)]
    A_list = [jnp.tanh(a) for a in AE_list[:num_WH]]
    E_list = [_sigmoid(e) for e in AE_list[num_WH:]]

    mem_flat = Prev_Memory.reshape(B, N, M1 * M2)
    W_list = []
    for i in range(H):
        K = jnp.tanh(K_list[i]).reshape(B, M1 * M2)
        dot = jnp.sum(mem_flat * K[:, None, :], axis=2)
        normK = jnp.sqrt(jnp.sum(K * K, axis=1, keepdims=True))
        normMem = jnp.sqrt(jnp.sum(mem_flat * mem_flat, axis=2))
        sim = dot / (normMem * normK + eps)
        beta = bgg[:, 0, i:i + 1]
        g = bgg[:, 1, i:i + 1]
        gamma = bgg[:, 2, i:i + 1]
        beta_c = 1.0 + _softplus_t20(beta)
        e = jnp.exp(jnp.clip(beta_c * sim, 0.0, 80.0))
        W_c = e / (jnp.sum(e, axis=1, keepdims=True) + eps)
        g_c = _sigmoid(g)
        W_g = g_c * W_c + (1.0 - g_c) * Prev_W_List[i]
        s = s_t[:, :, i]
        se = jnp.exp(jnp.clip(s, 0.0, 80.0))
        ss = se / (jnp.sum(se, axis=1, keepdims=True) + eps)
        W_hat = jnp.zeros_like(W_g)
        for k in range(S):
            W_hat = W_hat + ss[:, k:k + 1] * jnp.roll(W_g, shift_range - k, axis=1)
        gam_c = 1.0 + _softplus_t20(gamma)
        Ws = jnp.power(W_hat, gam_c)
        W_list.append(Ws / (jnp.sum(Ws, axis=1, keepdims=True) + eps))
    return W_list, A_list, E_list


# ---------------------------------------------------------------------------
if __name__ == "__main__":
    key = jax.random.PRNGKey(0)
    B, N, M1, M2 = 2, 8, 4, 4
    num_RH, num_WH, shift_range = 2, 1, 1
    H = num_RH + num_WH
    S = 2 * shift_range + 1

    ks = jax.random.split(key, 6)
    K_t = jax.random.normal(ks[0], (B, M1, H * M2), dtype=jnp.float32)
    AE = jax.random.normal(ks[1], (B, M1, 2 * num_WH * M2), dtype=jnp.float32)
    s_t = jax.random.normal(ks[2], (B, S, H), dtype=jnp.float32)
    bgg = jax.random.normal(ks[3], (B, 3, H), dtype=jnp.float32)
    Prev_Memory = jax.random.normal(ks[4], (B, N, M1, M2), dtype=jnp.float32)
    prevW_raw = jax.random.normal(ks[5], (H, B, N), dtype=jnp.float32)
    prevW = jax.nn.softmax(prevW_raw, axis=-1)
    Prev_W_List = [prevW[h] for h in range(H)]

    InterfaceMatrices = {'K_t': K_t, 'A_t_and_E_t': AE,
                         's_t': s_t, 'beta_g_gamma': bgg}
    prev_tensors = PrevHeadOpsTensors(Prev_W_List=Prev_W_List)

    op = MNTMHeadOpPallas(N, (M1, M2), num_RH, num_WH, shift_range=shift_range)
    out = op(InterfaceMatrices, Prev_Memory, prev_tensors)
    jax.block_until_ready(out.AllWeights)
    jax.block_until_ready(out.EraseMatList)
    jax.block_until_ready(out.AddMatList)

    # correctness check against a pure-JAX replica of the PyTorch forward
    W_ref, A_ref, E_ref = reference_forward(
        N, M1, M2, num_RH, num_WH, shift_range, 1e-8,
        InterfaceMatrices, Prev_Memory, Prev_W_List)
    for h in range(H):
        np.testing.assert_allclose(np.asarray(out.AllWeights[h]),
                                   np.asarray(W_ref[h]), rtol=5e-3, atol=5e-4)
    for i in range(num_WH):
        np.testing.assert_allclose(np.asarray(out.AddMatList[i]),
                                   np.asarray(A_ref[i]), rtol=2e-3, atol=2e-4)
        np.testing.assert_allclose(np.asarray(out.EraseMatList[i]),
                                   np.asarray(E_ref[i]), rtol=2e-3, atol=2e-4)

    print("KERNEL_OK")
</pallas_src>

<mosaic_0001>
module attributes {stable_mosaic.version = 11 : i64} {
  func.func @_fused_head_kernel(%arg0: i32, %arg1: memref<1x3x16xf32, #tpu.memory_space<vmem>>, %arg2: memref<1x8x16xf32, #tpu.memory_space<vmem>>, %arg3: memref<1x3x3xf32, #tpu.memory_space<vmem>>, %arg4: memref<1x3x3xf32, #tpu.memory_space<vmem>>, %arg5: memref<1x3x8xf32, #tpu.memory_space<vmem>>, %arg6: memref<1x4x4xf32, #tpu.memory_space<vmem>>, %arg7: memref<1x4x4xf32, #tpu.memory_space<vmem>>, %arg8: memref<1x3x8xf32, #tpu.memory_space<vmem>>, %arg9: memref<1x4x4xf32, #tpu.memory_space<vmem>>, %arg10: memref<1x4x4xf32, #tpu.memory_space<vmem>>) attributes {dimension_semantics = [#tpu.dimension_semantics<parallel>], iteration_bounds = array<i64: 2>, scalar_prefetch = 0 : i64, scratch_operands = 0 : i64, tpu.core_type = #tpu.core_type<tc>, window_params = [{transform_indices = @transform_0, window_bounds = array<i64: 1, 3, 16>}, {transform_indices = @transform_1, window_bounds = array<i64: 1, 8, 16>}, {transform_indices = @transform_2, window_bounds = array<i64: 1, 3, 3>}, {transform_indices = @transform_3, window_bounds = array<i64: 1, 3, 3>}, {transform_indices = @transform_4, window_bounds = array<i64: 1, 3, 8>}, {transform_indices = @transform_5, window_bounds = array<i64: 1, 4, 4>}, {transform_indices = @transform_6, window_bounds = array<i64: 1, 4, 4>}, {transform_indices = @transform_7, window_bounds = array<i64: 1, 3, 8>}, {transform_indices = @transform_8, window_bounds = array<i64: 1, 4, 4>}, {transform_indices = @transform_9, window_bounds = array<i64: 1, 4, 4>}]} {
    %c0 = arith.constant 0 : index
    %c0_0 = arith.constant 0 : index
    %c0_1 = arith.constant 0 : index
    %0 = vector.load %arg1[%c0, %c0_0, %c0_1] : memref<1x3x16xf32, #tpu.memory_space<vmem>>, vector<1x3x16xf32>
    %1 = math.tanh %0 : vector<1x3x16xf32>
    %c0_2 = arith.constant 0 : index
    %c0_3 = arith.constant 0 : index
    %c0_4 = arith.constant 0 : index
    %2 = vector.load %arg2[%c0_2, %c0_3, %c0_4] : memref<1x8x16xf32, #tpu.memory_space<vmem>>, vector<1x8x16xf32>
    "tpu.trace_start"() <{level = 10 : i32, message = "bhm,bnm->bhn"}> : () -> ()
    %cst = arith.constant dense<0.000000e+00> : vector<1x3x8xf32>
    %3 = tpu.matmul %1, %2, %cst {dimension_numbers = #tpu.dot_dimension_numbers<[2], [2], [1], [1], [0, 0, 0, 1, 1, 1], [0], [0]>, precision = #tpu.contract_precision<fp32>} : vector<1x3x16xf32>, vector<1x8x16xf32>, vector<1x3x8xf32> -> vector<1x3x8xf32>
    "tpu.trace_stop"() : () -> ()
    %4 = arith.mulf %1, %1 : vector<1x3x16xf32>
    %cst_5 = arith.constant dense<0.000000e+00> : vector<1x3xf32>
    %5 = vector.multi_reduction <add>, %4, %cst_5 [2] : vector<1x3x16xf32> to vector<1x3xf32>
    %6 = vector.shape_cast %5 : vector<1x3xf32> to vector<1x3x1xf32>
    %7 = math.sqrt %6 : vector<1x3x1xf32>
    %8 = arith.mulf %2, %2 : vector<1x8x16xf32>
    %cst_6 = arith.constant dense<0.000000e+00> : vector<1x8xf32>
    %9 = vector.multi_reduction <add>, %8, %cst_6 [2] : vector<1x8x16xf32> to vector<1x8xf32>
    %10 = math.sqrt %9 : vector<1x8xf32>
    %11 = vector.shape_cast %10 : vector<1x8xf32> to vector<1x1x8xf32>
    %12 = vector.broadcast %7 : vector<1x3x1xf32> to vector<1x3x8xf32>
    %13 = vector.broadcast %11 : vector<1x1x8xf32> to vector<1x3x8xf32>
    %14 = arith.mulf %12, %13 : vector<1x3x8xf32>
    %cst_7 = arith.constant 9.99999993E-9 : f32
    %15 = vector.broadcast %cst_7 : f32 to vector<1x3x8xf32>
    %16 = arith.addf %14, %15 : vector<1x3x8xf32>
    %17 = arith.divf %3, %16 : vector<1x3x8xf32>
    %c0_8 = arith.constant 0 : index
    %c0_9 = arith.constant 0 : index
    %c0_10 = arith.constant 0 : index
    %18 = vector.load %arg4[%c0_8, %c0_9, %c0_10] : memref<1x3x3xf32, #tpu.memory_space<vmem>>, vector<1x3x3xf32>
    %19 = vector.extract_strided_slice %18 {offsets = [0, 0, 0], sizes = [1, 3, 1], strides = [1, 1, 1]} : vector<1x3x3xf32> to vector<1x3x1xf32>
    %20 = vector.extract_strided_slice %18 {offsets = [0, 0, 1], sizes = [1, 3, 1], strides = [1, 1, 1]} : vector<1x3x3xf32> to vector<1x3x1xf32>
    %21 = vector.extract_strided_slice %18 {offsets = [0, 0, 2], sizes = [1, 3, 1], strides = [1, 1, 1]} : vector<1x3x3xf32> to vector<1x3x1xf32>
    %cst_11 = arith.constant 2.000000e+01 : f32
    %22 = vector.broadcast %cst_11 : f32 to vector<1x3x1xf32>
    %23 = arith.cmpf ogt, %19, %22 : vector<1x3x1xf32>
    %cst_12 = arith.constant 2.000000e+01 : f32
    %24 = vector.broadcast %cst_12 : f32 to vector<1x3x1xf32>
    %25 = arith.minimumf %19, %24 : vector<1x3x1xf32>
    %26 = math.exp %25 : vector<1x3x1xf32>
    %27 = math.log1p %26 : vector<1x3x1xf32>
    %28 = arith.select %23, %19, %27 : vector<1x3x1xi1>, vector<1x3x1xf32>
    %cst_13 = arith.constant 1.000000e+00 : f32
    %29 = vector.broadcast %cst_13 : f32 to vector<1x3x1xf32>
    %30 = arith.addf %29, %28 : vector<1x3x1xf32>
    %31 = vector.broadcast %30 : vector<1x3x1xf32> to vector<1x3x8xf32>
    %32 = arith.mulf %31, %17 : vector<1x3x8xf32>
    %cst_14 = arith.constant 0.000000e+00 : f32
    %cst_15 = arith.constant 8.000000e+01 : f32
    %33 = vector.broadcast %cst_14 : f32 to vector<1x3x8xf32>
    %34 = arith.maximumf %33, %32 : vector<1x3x8xf32>
    %35 = vector.broadcast %cst_15 : f32 to vector<1x3x8xf32>
    %36 = arith.minimumf %35, %34 : vector<1x3x8xf32>
    %37 = math.exp %36 : vector<1x3x8xf32>
    %cst_16 = arith.constant dense<0.000000e+00> : vector<1x3xf32>
    %38 = vector.multi_reduction <add>, %37, %cst_16 [2] : vector<1x3x8xf32> to vector<1x3xf32>
    %39 = vector.shape_cast %38 : vector<1x3xf32> to vector<1x3x1xf32>
    %cst_17 = arith.constant 9.99999993E-9 : f32
    %40 = vector.broadcast %cst_17 : f32 to vector<1x3x1xf32>
    %41 = arith.addf %39, %40 : vector<1x3x1xf32>
    %42 = vector.broadcast %41 : vector<1x3x1xf32> to vector<1x3x8xf32>
    %43 = arith.divf %37, %42 : vector<1x3x8xf32>
    %cst_18 = arith.constant 0.000000e+00 : f32
    %44 = vector.broadcast %cst_18 : f32 to vector<1x3x1xf32>
    %45 = arith.subf %44, %20 : vector<1x3x1xf32>
    %46 = math.exp %45 : vector<1x3x1xf32>
    %cst_19 = arith.constant 1.000000e+00 : f32
    %47 = vector.broadcast %cst_19 : f32 to vector<1x3x1xf32>
    %48 = arith.addf %47, %46 : vector<1x3x1xf32>
    %cst_20 = arith.constant 1.000000e+00 : f32
    %49 = vector.broadcast %cst_20 : f32 to vector<1x3x1xf32>
    %50 = arith.divf %49, %48 : vector<1x3x1xf32>
    %51 = vector.broadcast %50 : vector<1x3x1xf32> to vector<1x3x8xf32>
    %52 = arith.mulf %51, %43 : vector<1x3x8xf32>
    %cst_21 = arith.constant 1.000000e+00 : f32
    %53 = vector.broadcast %cst_21 : f32 to vector<1x3x1xf32>
    %54 = arith.subf %53, %50 : vector<1x3x1xf32>
    %c0_22 = arith.constant 0 : index
    %c0_23 = arith.constant 0 : index
    %c0_24 = arith.constant 0 : index
    %55 = vector.load %arg5[%c0_22, %c0_23, %c0_24] : memref<1x3x8xf32, #tpu.memory_space<vmem>>, vector<1x3x8xf32>
    %56 = vector.broadcast %54 : vector<1x3x1xf32> to vector<1x3x8xf32>
    %57 = arith.mulf %56, %55 : vector<1x3x8xf32>
    %58 = arith.addf %52, %57 : vector<1x3x8xf32>
    %c0_25 = arith.constant 0 : index
    %c0_26 = arith.constant 0 : index
    %c0_27 = arith.constant 0 : index
    %59 = vector.load %arg3[%c0_25, %c0_26, %c0_27] : memref<1x3x3xf32, #tpu.memory_space<vmem>>, vector<1x3x3xf32>
    %cst_28 = arith.constant 0.000000e+00 : f32
    %cst_29 = arith.constant 8.000000e+01 : f32
    %60 = vector.broadcast %cst_28 : f32 to vector<1x3x3xf32>
    %61 = arith.maximumf %60, %59 : vector<1x3x3xf32>
    %62 = vector.broadcast %cst_29 : f32 to vector<1x3x3xf32>
    %63 = arith.minimumf %62, %61 : vector<1x3x3xf32>
    %64 = math.exp %63 : vector<1x3x3xf32>
    %cst_30 = arith.constant dense<0.000000e+00> : vector<1x3xf32>
    %65 = vector.multi_reduction <add>, %64, %cst_30 [2] : vector<1x3x3xf32> to vector<1x3xf32>
    %66 = vector.shape_cast %65 : vector<1x3xf32> to vector<1x3x1xf32>
    %cst_31 = arith.constant 9.99999993E-9 : f32
    %67 = vector.broadcast %cst_31 : f32 to vector<1x3x1xf32>
    %68 = arith.addf %66, %67 : vector<1x3x1xf32>
    %69 = vector.broadcast %68 : vector<1x3x1xf32> to vector<1x3x3xf32>
    %70 = arith.divf %64, %69 : vector<1x3x3xf32>
    %cst_32 = arith.constant 0.000000e+00 : f32
    %71 = vector.broadcast %cst_32 : f32 to vector<1x3x8xf32>
    %72 = vector.extract_strided_slice %70 {offsets = [0, 0, 0], sizes = [1, 3, 1], strides = [1, 1, 1]} : vector<1x3x3xf32> to vector<1x3x1xf32>
    %73 = vector.extract_strided_slice %58 {offsets = [0, 0, 7], sizes = [1, 3, 1], strides = [1, 1, 1]} : vector<1x3x8xf32> to vector<1x3x1xf32>
    %74 = vector.extract_strided_slice %58 {offsets = [0, 0, 0], sizes = [1, 3, 7], strides = [1, 1, 1]} : vector<1x3x8xf32> to vector<1x3x7xf32>
    %75 = tpu.concatenate %73, %74 in 2 : vector<1x3x1xf32>, vector<1x3x7xf32> -> vector<1x3x8xf32>
    %76 = vector.broadcast %72 : vector<1x3x1xf32> to vector<1x3x8xf32>
    %77 = arith.mulf %76, %75 : vector<1x3x8xf32>
    %78 = arith.addf %71, %77 : vector<1x3x8xf32>
    %79 = vector.extract_strided_slice %70 {offsets = [0, 0, 1], sizes = [1, 3, 1], strides = [1, 1, 1]} : vector<1x3x3xf32> to vector<1x3x1xf32>
    %80 = vector.broadcast %79 : vector<1x3x1xf32> to vector<1x3x8xf32>
    %81 = arith.mulf %80, %58 : vector<1x3x8xf32>
    %82 = arith.addf %78, %81 : vector<1x3x8xf32>
    %83 = vector.extract_strided_slice %70 {offsets = [0, 0, 2], sizes = [1, 3, 1], strides = [1, 1, 1]} : vector<1x3x3xf32> to vector<1x3x1xf32>
    %84 = vector.extract_strided_slice %58 {offsets = [0, 0, 1], sizes = [1, 3, 7], strides = [1, 1, 1]} : vector<1x3x8xf32> to vector<1x3x7xf32>
    %85 = vector.extract_strided_slice %58 {offsets = [0, 0, 0], sizes = [1, 3, 1], strides = [1, 1, 1]} : vector<1x3x8xf32> to vector<1x3x1xf32>
    %86 = tpu.concatenate %84, %85 in 2 : vector<1x3x7xf32>, vector<1x3x1xf32> -> vector<1x3x8xf32>
    %87 = vector.broadcast %83 : vector<1x3x1xf32> to vector<1x3x8xf32>
    %88 = arith.mulf %87, %86 : vector<1x3x8xf32>
    %89 = arith.addf %82, %88 : vector<1x3x8xf32>
    %cst_33 = arith.constant 2.000000e+01 : f32
    %90 = vector.broadcast %cst_33 : f32 to vector<1x3x1xf32>
    %91 = arith.cmpf ogt, %21, %90 : vector<1x3x1xf32>
    %cst_34 = arith.constant 2.000000e+01 : f32
    %92 = vector.broadcast %cst_34 : f32 to vector<1x3x1xf32>
    %93 = arith.minimumf %21, %92 : vector<1x3x1xf32>
    %94 = math.exp %93 : vector<1x3x1xf32>
    %95 = math.log1p %94 : vector<1x3x1xf32>
    %96 = arith.select %91, %21, %95 : vector<1x3x1xi1>, vector<1x3x1xf32>
    %cst_35 = arith.constant 1.000000e+00 : f32
    %97 = vector.broadcast %cst_35 : f32 to vector<1x3x1xf32>
    %98 = arith.addf %97, %96 : vector<1x3x1xf32>
    %99 = vector.broadcast %98 : vector<1x3x1xf32> to vector<1x3x8xf32>
    %100 = math.powf %89, %99 : vector<1x3x8xf32>
    %cst_36 = arith.constant dense<0.000000e+00> : vector<1x3xf32>
    %101 = vector.multi_reduction <add>, %100, %cst_36 [2] : vector<1x3x8xf32> to vector<1x3xf32>
    %102 = vector.shape_cast %101 : vector<1x3xf32> to vector<1x3x1xf32>
    %cst_37 = arith.constant 9.99999993E-9 : f32
    %103 = vector.broadcast %cst_37 : f32 to vector<1x3x1xf32>
    %104 = arith.addf %102, %103 : vector<1x3x1xf32>
    %105 = tpu.reciprocal %104 {approx = true} : vector<1x3x1xf32> -> vector<1x3x1xf32>
    %106 = vector.broadcast %105 : vector<1x3x1xf32> to vector<1x3x8xf32>
    %107 = arith.mulf %100, %106 : vector<1x3x8xf32>
    %c0_38 = arith.constant 0 : index
    %c0_39 = arith.constant 0 : index
    %c0_40 = arith.constant 0 : index
    %108 = vector.load %arg8[%c0_38, %c0_39, %c0_40] : memref<1x3x8xf32, #tpu.memory_space<vmem>>, vector<1x3x8xf32>
    tpu.vector_store %arg8[%c0_38, %c0_39, %c0_40], %107 {strides = array<i32>} : memref<1x3x8xf32, #tpu.memory_space<vmem>>, vector<1x3x8xf32>,
    %c0_41 = arith.constant 0 : index
    %c0_42 = arith.constant 0 : index
    %c0_43 = arith.constant 0 : index
    %109 = vector.load %arg6[%c0_41, %c0_42, %c0_43] : memref<1x4x4xf32, #tpu.memory_space<vmem>>, vector<1x4x4xf32>
    %110 = math.tanh %109 : vector<1x4x4xf32>
    %c0_44 = arith.constant 0 : index
    %c0_45 = arith.constant 0 : index
    %c0_46 = arith.constant 0 : index
    %111 = vector.load %arg9[%c0_44, %c0_45, %c0_46] : memref<1x4x4xf32, #tpu.memory_space<vmem>>, vector<1x4x4xf32>
    tpu.vector_store %arg9[%c0_44, %c0_45, %c0_46], %110 {strides = array<i32>} : memref<1x4x4xf32, #tpu.memory_space<vmem>>, vector<1x4x4xf32>,
    %c0_47 = arith.constant 0 : index
    %c0_48 = arith.constant 0 : index
    %c0_49 = arith.constant 0 : index
    %112 = vector.load %arg7[%c0_47, %c0_48, %c0_49] : memref<1x4x4xf32, #tpu.memory_space<vmem>>, vector<1x4x4xf32>
    %cst_50 = arith.constant 0.000000e+00 : f32
    %113 = vector.broadcast %cst_50 : f32 to vector<1x4x4xf32>
    %114 = arith.subf %113, %112 : vector<1x4x4xf32>
    %115 = math.exp %114 : vector<1x4x4xf32>
    %cst_51 = arith.constant 1.000000e+00 : f32
    %116 = vector.broadcast %cst_51 : f32 to vector<1x4x4xf32>
    %117 = arith.addf %116, %115 : vector<1x4x4xf32>
    %cst_52 = arith.constant 1.000000e+00 : f32
    %118 = vector.broadcast %cst_52 : f32 to vector<1x4x4xf32>
    %119 = arith.divf %118, %117 : vector<1x4x4xf32>
    %c0_53 = arith.constant 0 : index
    %c0_54 = arith.constant 0 : index
    %c0_55 = arith.constant 0 : index
    %120 = vector.load %arg10[%c0_53, %c0_54, %c0_55] : memref<1x4x4xf32, #tpu.memory_space<vmem>>, vector<1x4x4xf32>
    tpu.vector_store %arg10[%c0_53, %c0_54, %c0_55], %119 {strides = array<i32>} : memref<1x4x4xf32, #tpu.memory_space<vmem>>, vector<1x4x4xf32>,
    return
  }
  func.func @transform_0(%arg0: i32) -> (i32, i32, i32) {
    %c0_i32 = arith.constant 0 : i32
    %c0_i32_0 = arith.constant 0 : i32
    %c0_i32_1 = arith.constant 0 : i32
    return %arg0, %c0_i32, %c0_i32_0 : i32, i32, i32
  }
  func.func @transform_1(%arg0: i32) -> (i32, i32, i32) {
    %c0_i32 = arith.constant 0 : i32
    %c0_i32_0 = arith.constant 0 : i32
    %c0_i32_1 = arith.constant 0 : i32
    return %arg0, %c0_i32, %c0_i32_0 : i32, i32, i32
  }
  func.func @transform_2(%arg0: i32) -> (i32, i32, i32) {
    %c0_i32 = arith.constant 0 : i32
    %c0_i32_0 = arith.constant 0 : i32
    %c0_i32_1 = arith.constant 0 : i32
    return %arg0, %c0_i32, %c0_i32_0 : i32, i32, i32
  }
  func.func @transform_3(%arg0: i32) -> (i32, i32, i32) {
    %c0_i32 = arith.constant 0 : i32
    %c0_i32_0 = arith.constant 0 : i32
    %c0_i32_1 = arith.constant 0 : i32
    return %arg0, %c0_i32, %c0_i32_0 : i32, i32, i32
  }
  func.func @transform_4(%arg0: i32) -> (i32, i32, i32) {
    %c0_i32 = arith.constant 0 : i32
    %c0_i32_0 = arith.constant 0 : i32
    %c0_i32_1 = arith.constant 0 : i32
    return %arg0, %c0_i32, %c0_i32_0 : i32, i32, i32
  }
  func.func @transform_5(%arg0: i32) -> (i32, i32, i32) {
    %c0_i32 = arith.constant 0 : i32
    %c0_i32_0 = arith.constant 0 : i32
    %c0_i32_1 = arith.constant 0 : i32
    return %arg0, %c0_i32, %c0_i32_0 : i32, i32, i32
  }
  func.func @transform_6(%arg0: i32) -> (i32, i32, i32) {
    %c0_i32 = arith.constant 0 : i32
    %c0_i32_0 = arith.constant 0 : i32
    %c0_i32_1 = arith.constant 0 : i32
    return %arg0, %c0_i32, %c0_i32_0 : i32, i32, i32
  }
  func.func @transform_7(%arg0: i32) -> (i32, i32, i32) {
    %c0_i32 = arith.constant 0 : i32
    %c0_i32_0 = arith.constant 0 : i32
    %c0_i32_1 = arith.constant 0 : i32
    return %arg0, %c0_i32, %c0_i32_0 : i32, i32, i32
  }
  func.func @transform_8(%arg0: i32) -> (i32, i32, i32) {
    %c0_i32 = arith.constant 0 : i32
    %c0_i32_0 = arith.constant 0 : i32
    %c0_i32_1 = arith.constant 0 : i32
    return %arg0, %c0_i32, %c0_i32_0 : i32, i32, i32
  }
  func.func @transform_9(%arg0: i32) -> (i32, i32, i32) {
    %c0_i32 = arith.constant 0 : i32
    %c0_i32_0 = arith.constant 0 : i32
    %c0_i32_1 = arith.constant 0 : i32
    return %arg0, %c0_i32, %c0_i32_0 : i32, i32, i32
  }
}

</mosaic_0001>

<bundles_post_ra>
// kernel: tpu_custom_call.1
= control target key start
LH: loop header
LB: loop body
LE: loop exit
PB: predicated region body
PF: predicated region fallthrough
CT: control target
= control target key end

     0   :  { %s1904_s0 = inlined_call_operand.vmem [shape: f32[2,3,16], index: 0, kind: input, shape index: {}]   ;;  %s1905_s1 = inlined_call_operand.vmem [shape: f32[2,8,16], index: 1, kind: input, shape index: {}]   ;;  %s1906_s2 = inlined_call_operand.vmem [shape: f32[2,3,3], index: 2, kind: input, shape index: {}]   ;;  %s1907_s3 = inlined_call_operand.vmem [shape: f32[2,3,3], index: 3, kind: input, shape index: {}]   ;;  %s1908_s4 = inlined_call_operand.vmem [shape: f32[2,3,8], index: 4, kind: input, shape index: {}]   ;;  %s1909_s5 = inlined_call_operand.vmem [shape: f32[2,4,4], index: 5, kind: input, shape index: {}]   ;;  %s1910_s6 = inlined_call_operand.vmem [shape: f32[2,4,4], index: 6, kind: input, shape index: {}]   ;;  %s1911_s7 = inlined_call_operand.vmem [shape: f32[2,3,8], index: 7, kind: output, shape index: {0}]   ;;  %s1912_s8 = inlined_call_operand.hbm [shape: f32[2,4,4], index: 8, kind: output, shape index: {1}]   ;;  %s1913_s9 = inlined_call_operand.hbm [shape: f32[2,4,4], index: 9, kind: output, shape index: {2}]  }
   0x1   :  { %1916 = sst [smem:[#allocation8_spill]] %s1904_s0 }
   0x2   :  { %1917 = sst [smem:[#allocation9_spill]] %s1905_s1 }
   0x3   :  { %1918 = sst [smem:[#allocation10_spill]] %s1906_s2 }
   0x4   :  { %15 = vsyncpa [#allocation3], 0 }
   0x5   :  { %17 = vsyncpa [#allocation3 + $0x1], 0 }
   0x6   :  { %18 = vsyncpa [#allocation5], 0 }
   0x7   :  { %20 = vsyncpa [#allocation5 + $0x1], 0  ;;  %s1673_s30 = smov 0   ;;  %s1675_s10 = smov 0  }
   0x8   :  { %s1677_s11 = smov 0   ;;  %s1679_s12 = smov 0  }
   0x9 LB: > { %s1694_s13 = sadd.s32 4294967295, %s1609_s12   ;;  %s1296_s14 = sadd.s32 4294967294, %s1609_s12   ;;  %s1609_s12 = sphi %s1679_s12, %s1933_s12   ;;  %s1605_s11 = sphi %s1677_s11, %s1932_s11   ;;  %s1601_s10 = sphi %s1675_s10, %s1931_s10   ;;  %s1597_s30 = sphi %s1673_s30, %s1930_s30  }
   0xa   : > { %s1698_s15 = sadd.s32 1, %s1609_s12   ;;  %s241_s16 = sadd.s32 1, %s1605_s11 }
   0xb   : > { %s238_s17 = ssub.s32 %s1609_s12, %s1698_s15  ;;  %p251_p0 = scmp.ne.s32.totalorder %s1605_s11, %s1601_s10 }
   0xc   : > { %p239_p1 = scmp.eq.s32.totalorder %s238_s17, 0  ;;  %p252_p2 = scmp.eq.s32.totalorder %s1694_s13, 1 }
   0xd   : > { %p257_p3 = scmp.ne.s32.totalorder %s1601_s10, %s1597_s30  ;;  %p258_p4 = scmp.eq.s32.totalorder %s1296_s14, 1 }
   0xe   : > { %s1709_s18 = scalar_select %p239_p1, %s1605_s11, %s241_s16  }
   0xf   : > { %p1711_p5 = por %p252_p2, %p251_p0  ;;  %p1715_p6 = por %p258_p4, %p257_p3 }
  0x10   : > { %p1299_p7 = scmp.ge.s32.totalorder %s1609_s12, 1  ;;  %p351_p8 = scmp.lt.s32.totalorder %s1609_s12, 3 }
  0x12   : > { %p352_p9 = pnand %p1299_p7, %p351_p8 }
  0x13   : > { %p419_p10 = scmp.lt.s32.totalorder (!%p352_p9), %s1694_s13, 1  ;;  %v1611_v0 = vmov (!%p352_p9), 0.0   ;;  %vm1612_vm0 = vmmov (!%p352_p9), 0   ;;  %v1613_v1 = vmov (!%p352_p9), 0   ;;  %vm454_vm1 = vcmask (!%p352_p9), 130048   ;;  %s1921_s1 = sld [smem:[#allocation9_spill]] (!%p352_p9) }
  0x14   : > { %355 = sbr.rel (%p352_p9) target bundleno = 787 (0x313), region = 48  ;;  %1343 = vmatprep.subr.mxu0 (!%p352_p9), %v1611_v0  ;;  %1328 = vmatprep.subr.mxu1 (!%p352_p9), %v1611_v0  ;;  %s1922_s0 = sld [smem:[#allocation8_spill]] (!%p352_p9)  ;;  %vm908_vm2 = vcmask (!%p352_p9), 124928   ;;  %vm1003_vm5 = vcmask (!%p352_p9), 18432   ;;  %v1614_v47 = vmov (!%p352_p9), 1   ;;  %v931_v54 = vlaneseq (!%p352_p9) }
  0x15   : > { %1345 = vmatprep.mubr.msk.f32.mxu0 (!%p352_p9), %vm1612_vm0, %v1611_v0  ;;  %1330 = vmatprep.mubr.msk.f32.mxu1 (!%p352_p9), %vm1612_vm0, %v1611_v0  ;;  %s1923_s2 = sld [smem:[#allocation10_spill]] (!%p352_p9)  ;;  %vm970_vm10 = vcmask (!%p352_p9), 59392   ;;  %s1616_s28 = smov (!%p352_p9), 1   ;;  %vm1017_vm11 = vcmask (!%p352_p9), 7168   ;;  %vm1038_vm12 = vcmask (!%p352_p9), 56320  }
  0x16   : > { %1473 = vset.pattern.permute.xlu1 (!%p352_p9), %v1613_v1  ;;  %1474 = vset.pattern.permute.xlu0 (!%p352_p9), %v1614_v47  ;;  %v932_v57 = vand.u32 (!%p352_p9), 127, %v931_v54  ;;  %v934_v58 = vshrl.u32 (!%p352_p9), %v931_v54, 7  ;;  %s1618_s14 = smov (!%p352_p9), 7   ;;  %s1619_s16 = smov (!%p352_p9), 127  }
  0x18   : > { %v935_v63 = vsub.s32 (!%p352_p9), %v932_v57, %v934_v58  ;;  %v1620_v58 = vmov (!%p352_p9), 2139095040  }
  0x1b   : > { %s420_s21 = scalar_select %p419_p10, %s1694_s13, 1 }
  0x1d   : > { %s1730_s22 = sshll.u32 %s420_s21, 2  ;;  %s1303_s23 = sshll.u32 %s420_s21, 3 }
  0x1e   : > { %s426_s26 = scalar_lea.vmem %s1921_s1, %s1303_s23  ;;  %s422_s29 = scalar_lea.vmem %s1922_s0, %s1730_s22 }
  0x1f   : > { %v453_v2 = vld [vmem:[%s426_s26] sm:$0xff]  ;;  %s434_s17 = scalar_lea.vmem %s1907_s3, %s1730_s22  ;;  %s430_s24 = scalar_lea.vmem %s1923_s2, %s1730_s22 }
  0x20   : > { %v459_v3 = vsel %vm454_vm1, %v453_v2, 0  ;;  %v451_v4 = vld [vmem:[%s422_s29] sm:$0x7]  ;;  %v919_v5 = vmul.f32 %v453_v2, %v453_v2  ;;  %s438_s27 = scalar_lea.vmem %s1908_s4, %s1730_s22  ;;  %s1617_s29 = smov 121  }
  0x21   : > { %v462_v6 = vand.u32 4294901760, %v459_v3  ;;  %1479 = vtanh.f32 %v451_v4  ;;  %v1744_v7 = vld [vmem:[%s434_s17] sm:$0x7]  ;;  %s446_s23 = scalar_lea.vmem %s1910_s6, %s1730_s22  ;;  %s442_s26 = scalar_lea.vmem %s1909_s5, %s1730_s22 }
  0x22   : > { %v920_v8 = vsel %vm454_vm1, %v919_v5, 0.0  ;;  %v946_v9 = vmin.f32 %v1744_v7, 20.0  ;;  %vm945_vm4 = vcmp.gt.f32.partialorder %v1744_v7, 20.0  ;;  %v998_v35 = vld [vmem:[%s430_s24] sm:$0x7]  ;;  %v977_v41 = vsub.f32 0.0, %v1744_v7 }
  0x23   : > { %1344 = vmatpush3.xpose.msra.mxu0 %v462_v6  ;;  %1329 = vmatpush3.xpose.msra.mxu1 %v462_v6  ;;  %v539_v11 = vsub.f32 %v459_v3, %v462_v6  ;;  %v999_v36 = vmax.f32 %v998_v35, 0.0 }
  0x24   : > { %1333 = vmatprep.subr.mxu1 %v1611_v0  ;;  %1348 = vmatprep.subr.mxu0 %v1611_v0  ;;  %v947_v10 = vmul.f32 1.442695, %v946_v9  ;;  %v978_v42 = vmul.f32 1.442695, %v977_v41 }
  0x25   : > { %921 = vadd.xlane.f32.xlu0 %v920_v8  ;;  %v540_v14 = vand.u32 4294901760, %v539_v11  ;;  %v1000_v37 = vmin.f32 %v999_v36, 80.0 }
  0x26   : > { %1481 = vpow2.f32 %v947_v10 }
  0x27   : > { %v541_v20 = vsub.f32 %v539_v11, %v540_v14  ;;  %v1001_v38 = vmul.f32 1.442695, %v1000_v37 }
  0x29   : > { %v542_v24 = vand.u32 4294901760, %v541_v20 }
  0x2b   : > { %v1480_v12 = vpop.eup %1479 }
  0x2c   : > { %v456_v13 = vsel %vm454_vm1, %v1480_v12, 0  ;;  %v907_v15 = vmul.f32 %v1480_v12, %v1480_v12 }
  0x2d   : > { %v527_v16 = vand.u32 4294901760, %v456_v13 }
  0x2e   : > { %v909_v17 = vsel %vm908_vm2, %v907_v15, 0.0 }
  0x2f   : > { %v528_v18 = vsub.f32 %v456_v13, %v527_v16  ;;  %910 = vadd.xlane.f32.xlu0 %v909_v17 }
  0x30   : > { %v1482_v19 = vpop.eup %1481 }
  0x31   : > { %v529_v21 = vand.u32 4294901760, %v528_v18  ;;  %v949_v22 = vadd.f32 1.0, %v1482_v19  ;;  %v952_v25 = vmul.f32 -0.5, %v1482_v19  ;;  %v955_v28 = vand.u32 2147483647, %v1482_v19 }
  0x33   : > { %1346 = vmatmul.mubr.f32.vlgmr.msra.gmra.mrb[0].mxu0 %v529_v21  ;;  %v530_v23 = vsub.f32 %v528_v18, %v529_v21  ;;  %1483 = vlog2.f32 %v949_v22  ;;  %v953_v27 = vadd.f32 1.0, %v952_v25  ;;  %vm956_vm3 = vcmp.lt.f32.partialorder %v955_v28, 0.0004427343  ;;  %v990_v25 = vld [vmem:[%s438_s27] sm:$0x7]  ;;  %s1815_s27 = sand.u32 1, %s1601_s10  }
  0x34   : > { %1349 = vmatpush3.xpose.msra.mxu0 %v540_v14  ;;  %1350 = vmatprep.mubr.msk.f32.mxu0 %vm1612_vm0, %v1611_v0  ;;  %1485 = vpow2.f32 %v1001_v38  ;;  %s1075_s24 = scalar_lea.sflag [#allocation3], %s1815_s27 }
  0x35   : > { %v531_v26 = vand.u32 4294901760, %v530_v23  ;;  %1353 = vmatprep.subr.mxu0 %v1611_v0  ;;  %v954_v29 = vmul.f32 %v1482_v19, %v953_v27  ;;  %1487 = vpow2.f32 %v978_v42 }
  0x37   : > { %1331 = vmatmul.mubr.f32.vlgmr.msra.gmra.mrb[0].mxu1 %v531_v26 }
  0x38   : > { %1334 = vmatpush3.xpose.msra.mxu1 %v542_v24  ;;  %1335 = vmatprep.mubr.msk.f32.mxu1 %vm1612_vm0, %v1611_v0 }
  0x39   : > { %1338 = vmatprep.subr.mxu1 %v1611_v0 }
  0x3b   : > { %1351 = vmatmul.mubr.f32.vlgmr.msra.gmra.mrb[0].mxu0 %v527_v16 }
  0x3c   : > { %1354 = vmatpush3.xpose.msra.mxu0 %v462_v6  ;;  %1355 = vmatprep.mubr.msk.f32.mxu0 %vm1612_vm0, %v1611_v0 }
  0x3d   : > { %v1484_v30 = vpop.eup %1483 }
  0x3e   : > { %v951_v31 = vmul.f32 0.6931472, %v1484_v30  ;;  %v1486_v39 = vpop.eup %1485 }
  0x3f   : > { %1336 = vmatmul.mubr.f32.vlgmr.msra.gmra.mrb[0].mxu1 %v527_v16  ;;  %v1004_v40 = vsel %vm1003_vm5, %v1486_v39, 0.0  ;;  %v1488_v43 = vpop.eup %1487 }
  0x40   : > { %1339 = vmatpush3.xpose.msra.mxu1 %v539_v11  ;;  %1340 = vmatprep.mubr.msk.f32.mxu1 %vm1612_vm0, %v1611_v0  ;;  %v957_v32 = vsel %vm956_vm3, %v954_v29, %v951_v31  ;;  %v980_v44 = vadd.f32 1.0, %v1488_v43 }
  0x41   : > { %v958_v33 = vsel %vm945_vm4, %v1744_v7, %v957_v32  ;;  %v1615_v7 = vmov 2  }
  0x42   : > { %v1763_v34 = vadd.f32 1.0, %v958_v33  ;;  %1489 = vrcp.f32 %v980_v44 }
  0x43   : > { %1356 = vmatmul.mubr.f32.vlgmr.msra.gmra.mrb[0].mxu0 %v527_v16 }
  0x44   : > { %962 = vperm.xlu1 %1473, %v1763_v34  }
  0x47   : > { %1341 = vmatmul.mubr.f32.vlgmr.msra.gmra.mrb[0].mxu1 %v528_v18 }
  0x48   : > { %1475 = vset.pattern.permute.xlu1 %v1614_v47 }
  0x4c   : > { %v1490_v45 = vpop.eup %1489 }
  0x4d   : > { %v989_v46 = vsub.f32 1.0, %v1490_v45 }
  0x68   : > { %1005 = vadd.xlane.f32.xlu1 %v1004_v40 }
  0x79   : > { %993 = vperm.xlu1 %1475, %v989_v46  }
  0xb2   : > { %v922_v48 = vpop.xlane.xlu0 %921 }
  0xb3   : > { %1491 = vrsqrt.f32 %v922_v48  ;;  %vm925_vm6 = vcmp.eq.f32.partialorder %v922_v48, inf  ;;  %v928_v59 = vand.u32 2147483648, %v922_v48  ;;  %vm927_vm7 = vcmp.eq.f32.partialorder %v922_v48, 0.0 }
  0xbc   : > { %v911_v49 = vpop.xlane.xlu0 %910 }
  0xbd   : > { %1493 = vrsqrt.f32 %v911_v49  ;;  %v1492_v53 = vpop.eup %1491  ;;  %vm914_vm8 = vcmp.eq.f32.partialorder %v911_v49, inf  ;;  %v917_v2 = vand.u32 2147483648, %v911_v49  ;;  %vm916_vm9 = vcmp.eq.f32.partialorder %v911_v49, 0.0 }
  0xbe   : > { %v924_v55 = vmul.f32 %v1492_v53, %v922_v48 }
  0xc0   : > { %v926_v60 = vsel %vm925_vm6, %v922_v48, %v924_v55 }
  0xc1   : > { %v929_v0 = vsel %vm927_vm7, %v928_v59, %v926_v60 }
  0xc2   : > { %v936_v5 = vrot.slane %v929_v0, %v935_v63 }
  0xc3   : > { %v963_v50 = vpop.permute.xlu1 %962 }
  0xc7   : > { %v1494_v56 = vpop.eup %1493 }
  0xc8   : > { %v913_v61 = vmul.f32 %v1494_v56, %v911_v49 }
  0xca   : > { %v915_v4 = vsel %vm914_vm8, %v911_v49, %v913_v61 }
  0xcb   : > { %v918_v6 = vsel %vm916_vm9, %v917_v2, %v915_v4 }
  0xcc   : > { %v940_v8 = vmul.f32 %v936_v5, %v918_v6 }
  0xce   : > { %v941_v9 = vadd.f32 1e-08, %v940_v8 }
  0xf5   : > { %v1006_v51 = vpop.xlane.xlu1 %1005 }
  0xf6   : > { %v1007_v52 = vadd.f32 1e-08, %v1006_v51 }
  0xf8   : > { %1495 = vrcp.f32 %v1007_v52 }
  0xf9   : > { %1497 = vrcp.f32 %v941_v9  ;;  %v994_v27 = vpop.permute.xlu1 %993 }
  0xfa   : > { %v996_v29 = vmul.f32 %v994_v27, %v990_v25 }
 0x102   : > { %v1496_v62 = vpop.eup %1495 }
 0x103   : > { %v1009_v3 = vmul.f32 %v1496_v62, %v1486_v39  ;;  %v1498_v15 = vpop.eup %1497 }
 0x105   : > { %1027 = vperm.xlu1 %1475, %v1009_v3  }
 0x109   : > { %1477 = vset.pattern.permute.xlu1 %v1615_v7 }
 0x10a   : > { %1041 = vperm.xlu1 %1477, %v1009_v3  }
 0x116   : > { %v903_v10 = vpop.f32.mrb[0].mxu0 }
 0x117   : > { %v1357_v11 = vpop.f32.mrb[1].mxu0 }
 0x118   : > { %v1062_v11 = vld [vmem:[%s446_s23] sm:$0xf] }
 0x11a   : > { %v683_v12 = vpop.f32.mrb[0].mxu1 }
 0x11b   : > { %v1358_v13 = vadd.f32 %v903_v10, %v683_v12  ;;  %v1342_v14 = vpop.f32.mrb[1].mxu1 }
 0x11c   : > { %v1063_v14 = vsub.f32 0.0, %v1062_v11 }
 0x11d   : > { %v943_v16 = vmul.f32 %v1498_v15, %v1358_v13 }
 0x11e   : > { %v1064_v15 = vmul.f32 1.442695, %v1063_v14 }
 0x11f   : > { %v965_v17 = vmul.f32 %v963_v50, %v943_v16  ;;  %v1058_v16 = vld [vmem:[%s442_s26] sm:$0xf]  ;;  %s1621_s26 = smov [#allocation2]  }
 0x121   : > { %v966_v18 = vmax.f32 %v965_v17, 0.0 }
 0x123   : > { %v967_v19 = vmin.f32 %v966_v18, 80.0 }
 0x125   : > { %v968_v20 = vmul.f32 1.442695, %v967_v19 }
 0x127   : > { %1499 = vpow2.f32 %v968_v20 }
 0x131   : > { %v1500_v21 = vpop.eup %1499 }
 0x132   : > { %v971_v22 = vsel %vm970_vm10, %v1500_v21, 0.0 }
 0x133   : > { %972 = vadd.xlane.f32.xlu0 %v971_v22 }
 0x149   : > { %985 = vperm.xlu0 %1474, %v1490_v45  }
 0x14d   : > { %1476 = vset.pattern.permute.xlu0 %v1613_v1 }
 0x14e   : > { %1021 = vperm.xlu0 %1476, %v1009_v3  }
 0x152   : > { %1478 = vset.pattern.permute.xlu0 %v1615_v7 }
 0x184   : > { %v1028_v33 = vpop.permute.xlu1 %1027 }
 0x189   : > { %v1042_v35 = vpop.permute.xlu1 %1041 }
 0x1c0   : > { %v973_v23 = vpop.xlane.xlu0 %972 }
 0x1c1   : > { %v974_v24 = vadd.f32 1e-08, %v973_v23 }
 0x1c3   : > { %1501 = vrcp.f32 %v974_v24 }
 0x1c8   : > { %v986_v28 = vpop.permute.xlu0 %985 }
 0x1cd   : > { %v1502_v26 = vpop.eup %1501  ;;  %v1022_v36 = vpop.permute.xlu0 %1021 }
 0x1ce   : > { %v976_v30 = vmul.f32 %v1502_v26, %v1500_v21 }
 0x1d0   : > { %v988_v31 = vmul.f32 %v986_v28, %v976_v30 }
 0x1d2   : > { %v997_v32 = vadd.f32 %v996_v29, %v988_v31 }
 0x1d4   : > { %1014 = vrot.lane.b32.xlu1 %v997_v32, %s1616_s28  ;;  %1011 = vrot.lane.b32.xlu0 %v997_v32, %s1617_s29  ;;  %v1030_v41 = vmul.f32 %v1028_v33, %v997_v32  ;;  %s1914_s28 = sshll.u32 %s1694_s13, 6  ;;  %s1915_s29 = sshll.u32 %s1815_s27, 2 }
 0x1d5   : > { %s1824_s17 = scalar_lea.hbm %s1912_s8, %s1914_s28  ;;  %s411_s21 = scalar_lea.vmem [#allocation2], %s1915_s29 }
 0x1d6   : > { %s1096_s23 = sshll.u32 %s411_s21, 4  ;;  %s1829_s23 = int_to_ptr.vmem [resolvable:$true] %s1096_s23 }
 0x1d7   : > { %s1515_s25 = scalar_lea.vmem %s1829_s23, 64 }
 0x1d8   : > { %1035 = vrot.lane.b32.xlu1 %v997_v32, %s1618_s14  ;;  %1032 = vrot.lane.b32.xlu0 %v997_v32, %s1619_s16  ;;  %p1516_p11 = scmp.ne.s32.totalorder %s1829_s23, %s1515_s25  ;;  %s1519_s14 = sshll.u32 %s1621_s26, 4  ;;  %s1520_s14 = int_to_ptr.vmem [resolvable:$false] %s1519_s14 }
 0x1d9   : > { %s1521_s16 = scalar_lea.vmem %s1520_s14, 128  ;;  %p1522_p0 = scmp.lt.s32.totalorder %s1829_s23, %s1520_s14 }
 0x1da   : > { %p1517_p12 = pnand %p1516_p11, %p1711_p5  ;;  %p1523_p1 = scmp.lt.s32.totalorder %s1521_s16, %s1515_s25 }
 0x1dc   : > { %1047 = vperm.xlu0 %1478, %v1763_v34   ;;  %p1518_p13 = pneg %p1517_p12  ;;  %p1524_p2 = por %p1523_p1, %p1522_p0 }
 0x1de   : > { %p1525_p3 = pnand %p1524_p2, %p1518_p13 }
 0x246   : > { %v1015_v37 = vpop.permute.xlu1 %1014  ;;  %v1012_v38 = vpop.permute.xlu0 %1011 }
 0x247   : > { %v1018_v39 = vsel %vm1017_vm11, %v1012_v38, %v1015_v37 }
 0x248   : > { %v1024_v40 = vmul.f32 %v1022_v36, %v1018_v39 }
 0x24a   : > { %v1036_v42 = vpop.permute.xlu1 %1035  ;;  %v1033_v43 = vpop.permute.xlu0 %1032  ;;  %v1031_v45 = vadd.f32 %v1030_v41, %v1024_v40 }
 0x24b   : > { %v1039_v44 = vsel %vm1038_vm12, %v1033_v43, %v1036_v42 }
 0x24c   : > { %v1044_v46 = vmul.f32 %v1042_v35, %v1039_v44 }
 0x24e   : > { %v1045_v47 = vadd.f32 %v1044_v46, %v1031_v45 }
 0x250   : > { %v1367_v48 = vand.u32 2147483647, %v1045_v47  ;;  %vm1388_vm1 = vcmp.eq.f32.partialorder %v1045_v47, 0  ;;  %vm1387_vm8 = vcmp.lt.f32.partialorder %v1045_v47, 0 }
 0x252   : > { %1503 = vlog2.f32 %v1367_v48  ;;  %vm1391_vm2 = vcmp.gt.f32.partialorder %v1367_v48, 1065353216 }
 0x25b   : > { %v1048_v49 = vpop.permute.xlu0 %1047 }
 0x25c   : > { %v1504_v34 = vpop.eup %1503  ;;  %v1371_v50 = vand.u32 2147483647, %v1048_v49  ;;  %v1376_v52 = vtrunc.f32 %v1048_v49  ;;  %vm1375_vm15 = vcmp.lt.f32.partialorder %v1048_v49, 0 }
 0x25d   : > { %v1369_v51 = vmul.f32 %v1504_v34, %v1048_v49  ;;  %vm1781_vm3 = vmand %vm1375_vm15, %vm1388_vm1  ;;  %v1407_v59 = vsel %vm1375_vm15, 0, %v1620_v58  ;;  %v1395_v62 = vsel %vm1375_vm15, 2139095040, %v1613_v1 }
 0x25e   : > { %v1380_v53 = vtrunc.f32 %v1371_v50  ;;  %vm1372_vm13 = vcmp.eq.f32.partialorder %v1371_v50, 2139095040  ;;  %vm1377_vm14 = vcmp.ne.f32.partialorder %v1048_v49, %v1376_v52  ;;  %vm1786_vm5 = vmxor %vm1375_vm15, %vm1391_vm2  ;;  %vm1379_vm11 = vcmp.lt.f32.partialorder %v1371_v50, 1266679808 }
 0x25f   : > { %1505 = vpow2.f32 %v1369_v51  ;;  %vm1378_vm0 = vmor %vm1377_vm14, %vm1372_vm13  ;;  %v1408_v63 = vxor.u32 2147483648, %v1407_v59  ;;  %vm1390_vm2 = vcmp.lt.s32.totalorder %v1045_v47, 0  ;;  %vm1412_vm15 = vcmp.ne.f32.partialorder %v1045_v47, %v1045_v47 }
 0x260   : > { %v1381_v54 = vcvt.f32.s32 %v1380_v53  ;;  %vm1384_vm6 = vmneg %vm1378_vm0  ;;  %1507 = vpow2.f32 %v1064_v15 }
 0x261   : > { %vm1402_vm9 = vmor %vm1781_vm3, %vm1786_vm5  ;;  %vm1413_vm5 = vcmp.ne.f32.partialorder %v1048_v49, %v1048_v49  ;;  %1509 = vtanh.f32 %v1058_v16 }
 0x262   : > { %v1382_v55 = vand.u32 1, %v1381_v54  ;;  %vm1393_vm12 = vmand %vm1387_vm8, %vm1378_vm0  ;;  %v1403_v2 = vsel %vm1402_vm9, 2139095040, %v1613_v1  ;;  %vm1392_vm0 = vcmp.eq.f32.partialorder %v1367_v48, 2139095040 }
 0x264   : > { %vm1383_vm4 = vcmp.eq.s32.totalorder %v1382_v55, 1 }
 0x265   : > { %vm1385_vm7 = vmand %vm1383_vm4, %vm1384_vm6  ;;  %vm1404_vm4 = vcmp.eq.f32.partialorder %v1045_v47, 3212836864  ;;  %vm1373_vm6 = vcmp.eq.f32.partialorder %v1048_v49, 0 }
 0x266   : > { %vm1386_vm14 = vmand %vm1379_vm11, %vm1385_vm7  ;;  %v1405_v6 = vsel %vm1404_vm4, 1065353216, %v1403_v2  ;;  %vm1374_vm11 = vcmp.eq.f32.partialorder %v1048_v49, 1065353216 }
 0x267   : > { %v1409_v4 = vsel %vm1386_vm14, %v1408_v63, %v1407_v59  ;;  %vm1397_vm3 = vmand %vm1390_vm2, %vm1386_vm14 }
 0x268   : > { %v1410_v8 = vsel %vm1387_vm8, %v1409_v4, %v1407_v59  ;;  %vm1414_vm7 = vmor %vm1412_vm15, %vm1413_vm5 }
 0x269   : > { %v1506_v60 = vpop.eup %1505 }
 0x26a   : > { %v1394_v61 = vsel %vm1393_vm12, 2143289344, %v1506_v60  ;;  %v1508_v17 = vpop.eup %1507 }
 0x26b   : > { %v1396_v0 = vsel %vm1388_vm1, %v1395_v62, %v1394_v61  ;;  %vm1389_vm1 = vcmp.eq.f32.partialorder %v1045_v47, 1065353216  ;;  %v1066_v18 = vadd.f32 1.0, %v1508_v17  ;;  %v1510_v19 = vpop.eup %1509 }
 0x26c   : > { %v1398_v3 = vxor.u32 2147483648, %v1396_v0  ;;  %vm1416_vm9 = vmor %vm1389_vm1, %vm1373_vm6 }
 0x26d   : > { %1511 = vrcp.f32 %v1066_v18 }
 0x26e   : > { %v1399_v5 = vsel %vm1397_vm3, %v1398_v3, %v1396_v0 }
 0x26f   : > { %v1406_v7 = vsel %vm1372_vm13, %v1405_v6, %v1399_v5  ;;  %vm1060_vm13 = vcmask 27648  }
 0x270   : > { %v1411_v1 = vsel %vm1392_vm0, %v1410_v8, %v1406_v7  ;;  %1061 = vst.msk [vmem:[%s411_s21] sm:$0xf] %vm1060_vm13, %v1510_v19 }
 0x271   : > { %v1415_v9 = vsel %vm1414_vm7, 2143289344, %v1411_v1 }
 0x272   : > { %v1417_v10 = vsel %vm1416_vm9, 1065353216, %v1415_v9 }
 0x273   : > { %v1806_v12 = vsel %vm1374_vm11, %v1045_v47, %v1417_v10 }
 0x274   : > { %v1051_v13 = vsel %vm970_vm10, %v1806_v12, 0.0 }
 0x275   : > { %1052 = vadd.xlane.f32.xlu1 %v1051_v13 }
 0x277   : > { %v1512_v20 = vpop.eup %1511 }
 0x278   : > { %1528 = shalt.err (!%p1525_p3)
}
 0x279   : > { %s1529_s21 = scalar_lea.hbm %s1824_s17, 64  ;;  %s1533_s26 = scalar_lea.hbm %s1912_s8, 128 }
 0x27a   : > { %p1530_p4 = scmp.ne.s32.totalorder %s1824_s17, %s1529_s21  ;;  %p1534_p9 = scmp.lt.u32.totalorder %s1824_s17, %s1912_s8 }
 0x27b   : > { %p1535_p10 = scmp.lt.u32.totalorder %s1533_s26, %s1529_s21  ;;  %p1537_p12 = scmp.lt.u32.totalorder %s1529_s21, %s1824_s17 }
 0x27c   : > { %p1531_p7 = pnand %p1530_p4, %p1711_p5 }
 0x27d   : > { %p1536_p11 = por %p1535_p10, %p1534_p9 }
 0x27e   : > { %p1532_p8 = pneg %p1531_p7 }
 0x27f   : > { %p1538_p13 = por %p1537_p12, %p1536_p11 }
 0x281   : > { %p1539_p0 = pnand %p1538_p13, %p1532_p8 }
 0x283   : > { %1542 = shalt.err (!%p1539_p0)
}
 0x284   : > { %1419 = dma.vmem_to_hbm [thread:$0]  (%p1711_p5), %s1829_s23, 64, %s1824_s17, %s1075_s24  }
 0x285   : > { %s1928_s28 = sshll.u32 %s1815_s27, 2  ;;  %s1929_s0 = sshll.u32 %s1694_s13, 6 }
 0x286   : > { %s418_s29 = scalar_lea.vmem [#allocation4], %s1928_s28  ;;  %s1861_s21 = scalar_lea.hbm %s1913_s9, %s1929_s0 }
 0x287   : > { %1069 = vst.msk [vmem:[%s418_s29] sm:$0xf] %vm1060_vm13, %v1512_v20  ;;  %s1109_s26 = sshll.u32 %s418_s29, 4  ;;  %s1080_s14 = scalar_lea.sflag [#allocation5], %s1815_s27  ;;  %s1110_s26 = int_to_ptr.vmem [resolvable:$true] %s1109_s26 }
 0x288   : > { %s1543_s1 = scalar_lea.vmem %s1110_s26, 64  ;;  %s1622_s2 = smov [#allocation4]  }
 0x289   : > { %p1544_p1 = scmp.ne.s32.totalorder %s1110_s26, %s1543_s1  ;;  %s1547_s17 = sshll.u32 %s1622_s2, 4  ;;  %s1548_s17 = int_to_ptr.vmem [resolvable:$false] %s1547_s17 }
 0x28a   : > { %s1549_s23 = scalar_lea.vmem %s1548_s17, 128  ;;  %p1550_p4 = scmp.lt.s32.totalorder %s1110_s26, %s1548_s17 }
 0x28b   : > { %p1545_p2 = pnand %p1544_p1, %p1711_p5  ;;  %p1551_p7 = scmp.lt.s32.totalorder %s1549_s23, %s1543_s1 }
 0x28d   : > { %p1546_p3 = pneg %p1545_p2  ;;  %p1552_p8 = por %p1551_p7, %p1550_p4 }
 0x28f   : > { %p1553_p9 = pnand %p1552_p8, %p1546_p3 }
 0x291   : > { %1556 = shalt.err (!%p1553_p9)
}
 0x292   : > { %s1557_s13 = scalar_lea.hbm %s1861_s21, 64  ;;  %s1561_s2 = scalar_lea.hbm %s1913_s9, 128 }
 0x293   : > { %p1558_p10 = scmp.ne.s32.totalorder %s1861_s21, %s1557_s13  ;;  %p1562_p13 = scmp.lt.u32.totalorder %s1861_s21, %s1913_s9 }
 0x294   : > { %p1563_p0 = scmp.lt.u32.totalorder %s1561_s2, %s1557_s13  ;;  %p1565_p2 = scmp.lt.u32.totalorder %s1557_s13, %s1861_s21 }
 0x295   : > { %p1559_p11 = pnand %p1558_p10, %p1711_p5 }
 0x296   : > { %p1564_p1 = por %p1563_p0, %p1562_p13 }
 0x297   : > { %p1560_p12 = pneg %p1559_p11 }
 0x298   : > { %p1566_p3 = por %p1565_p2, %p1564_p1 }
 0x29a   : > { %p1567_p4 = pnand %p1566_p3, %p1560_p12 }
 0x29c   : > { %1570 = shalt.err (!%p1567_p4)
}
 0x29d   : > { %1420 = dma.vmem_to_hbm [thread:$0]  (%p1711_p5), %s1110_s26, 64, %s1861_s21, %s1080_s14  }
 0x29e   : > { %s450_s25 = scalar_lea.vmem %s1911_s7, %s1730_s22 }
 0x302   : > { %v1053_v21 = vpop.xlane.xlu1 %1052 }
 0x303   : > { %v1054_v22 = vadd.f32 1e-08, %v1053_v21 }
 0x305   : > { %1513 = vrcp.f32 %v1054_v22 }
 0x30f   : > { %v1514_v23 = vpop.eup %1513 }
 0x310   : > { %v1056_v24 = vmul.f32 %v1514_v23, %v1806_v12 }
 0x312   : > { %1057 = vst.msk [vmem:[%s450_s25] sm:$0x7] %vm970_vm10, %v1056_v24 }
 0x313 PF: > { %p1430_p7 = scmp.ge.s32.totalorder %s1609_s12, 2  ;;  %s1128_s19 = sand.u32 1, %s1597_s30  }
 0x314   : > { %s1129_s16 = scalar_lea.sflag [#allocation3], %s1128_s19 }
 0x315   : > { %p1424_p5 = pnand %p1430_p7, %p1715_p6 }
 0x317   : > { %1588 = dma.done.wait (!%p1424_p5), %s1129_s16, 64  }
 0x318   : > { %1590 = vsyncadd (!%p1424_p5), %s1129_s16, 4294967232  ;;  %s1138_s21 = scalar_lea.sflag [#allocation5], %s1128_s19 }
 0x319   : > { %1592 = dma.done.wait (!%p1424_p5), %s1138_s21, 64  }
 0x31a   : > { %1594 = vsyncadd (!%p1424_p5), %s1138_s21, 4294967232  ;;  %p23_p8 = scmp.ge.s32.totalorder %s1698_s15, 4   ;;  %s1930_s30 = smov %s1601_s10 }
 0x31b   : > { %s1931_s10 = smov %s1605_s11  ;;  %s1932_s11 = smov %s1709_s18 }
 0x31c   : > { %s1933_s12 = smov %s1698_s15  ;;  %25 = sbr.rel (!%p23_p8) target bundleno = 9 (0x9), region = 130 }
 0x323   :  { %1143 = vsyncpa [#allocation3], 1 }
 0x324   :  { %1145 = vsyncpa [#allocation3 + $0x1], 1 }
 0x325   :  { %1146 = vsyncpa [#allocation5], 1 }
 0x326   :  { %1148 = vsyncpa [#allocation5 + $0x1], 1 }

</bundles_post_ra>
